<compile_context>
chip_gen: v5e
topology: v5e:2x2
jax: 0.10.0
libtpu: 0.0.40
codegen_flags: <defaults>
</compile_context>

<pallas_src>
import functools
import math

import jax
import jax.numpy as jnp
from jax.experimental import pallas as pl
from jax.experimental.pallas import tpu as pltpu


def _round_up(x, m):
    return ((x + m - 1) // m) * m


def _mlp_kernel(n_hidden, x_ref, w1_ref, b1_ref, wh_ref, bh_ref, wl_ref, bl_ref,
                out_ref):
    """One batch tile of the whole MLP forward; all weights resident in VMEM."""
    # First layer: (TILE_N, 5) @ (5, w_pad) + b, ReLU.  f32 accumulation.
    h = jnp.dot(x_ref[...].astype(jnp.bfloat16), w1_ref[...],
                preferred_element_type=jnp.float32) + b1_ref[...]
    h = jnp.maximum(h, 0.0)

    # Hidden layers over the packed (n_hidden, w_pad, w_pad) stack.
    if n_hidden > 0:
        if n_hidden <= 8:
            for i in range(n_hidden):          # static unroll for shallow nets
                h = jnp.dot(h.astype(jnp.bfloat16), wh_ref[i],
                            preferred_element_type=jnp.float32) + bh_ref[i]
                h = jnp.maximum(h, 0.0)
        else:                                  # visible loop for deep nets
            def body(i, hc):
                hn = jnp.dot(hc.astype(jnp.bfloat16), wh_ref[i],
                             preferred_element_type=jnp.float32) + bh_ref[i]
                return jnp.maximum(hn, 0.0)
            h = jax.lax.fori_loop(0, n_hidden, body, h)

    # Final layer, lane-dense in the batch dimension:
    #   (1, w_pad) @ (w_pad, TILE_N) -> (1, TILE_N).  No activation.
    ht = jnp.transpose(h).astype(jnp.bfloat16)              # (w_pad, TILE_N)
    y = jnp.dot(wl_ref[...], ht, preferred_element_type=jnp.float32)
    out_ref[...] = (y + bl_ref[0]).astype(out_ref.dtype)    # (1, TILE_N)


@functools.partial(jax.jit, static_argnames=("n_hidden",))
def _run(x, w1, b1, wh, bh, wl, bl, *, n_hidden):
    N = x.shape[0]
    w_pad = w1.shape[1]
    nh_dim = wh.shape[0]

    # Lane-dense tiles (multiple of 128); >= 2 grid steps whenever N >= 256 so
    # the "parallel" batch axis can shard across v7x's 2 TensorCores.
    TILE_N = max(128, min(512, _round_up(-(-N // 2), 128)))
    N_pad = _round_up(N, TILE_N)
    if N_pad != N:
        x = jnp.pad(x, ((0, N_pad - N), (0, 0)))
    grid = (N_pad // TILE_N,)

    def _nbytes(a):
        return a.size * a.dtype.itemsize

    # VMEM budget: resident operands are still double-buffered by BlockSpec.
    resident = sum(_nbytes(a) for a in (w1, b1, wh, bh, wl))
    streamed = 2 * (TILE_N * 5 * 4 + TILE_N * 4)          # x tile + out tile
    act = 6 * TILE_N * w_pad * 4                          # activation headroom
    vmem_limit = int(min(max(2 * resident + streamed + act + (4 << 20),
                             32 << 20), 64 << 20))

    cost = pl.CostEstimate(
        flops=2 * N_pad * (5 * w_pad + n_hidden * w_pad * w_pad + w_pad),
        transcendentals=0,
        bytes_accessed=sum(_nbytes(a) for a in (x, w1, b1, wh, bh, wl, bl))
        + N_pad * 4,
    )

    out = pl.pallas_call(
        functools.partial(_mlp_kernel, n_hidden),
        out_shape=jax.ShapeDtypeStruct((1, N_pad), jnp.float32),
        grid=grid,
        in_specs=[
            pl.BlockSpec((TILE_N, 5), lambda i: (i, 0)),          # x tiles (f32)
            pl.BlockSpec((5, w_pad), lambda i: (0, 0)),           # W1 (resident)
            pl.BlockSpec((1, w_pad), lambda i: (0, 0)),           # b1
            pl.BlockSpec((nh_dim, w_pad, w_pad), lambda i: (0, 0, 0)),  # hidden W
            pl.BlockSpec((nh_dim, 1, w_pad), lambda i: (0, 0, 0)),      # hidden b
            pl.BlockSpec((1, w_pad), lambda i: (0, 0)),           # W_last row
            pl.BlockSpec(memory_space=pltpu.MemorySpace.SMEM),    # b_last scalar
        ],
        out_specs=pl.BlockSpec((1, TILE_N), lambda i: (0, i)),
        compiler_params=pltpu.CompilerParams(
            dimension_semantics=("parallel",),
            vmem_limit_bytes=vmem_limit),
        cost_estimate=cost,
    )(x, w1, b1, wh, bh, wl, bl)

    return out[0, :N].reshape(N, 1)


def init_net_params(key, w, d):
    """Matches Net.__init__ with activation_func=True:
    nn.init.kaiming_uniform_(weight) (a=0, fan_in, leaky_relu gain=sqrt(2)),
    nn.init.ones_(bias). Weights stored pre-transposed as [in, out]."""
    dims = [5] + [w] * d + [1]
    params = []
    for i in range(len(dims) - 1):
        fan_in, fan_out = dims[i], dims[i + 1]
        key, sub = jax.random.split(key)
        bound = math.sqrt(2.0) * math.sqrt(3.0 / fan_in)
        W = jax.random.uniform(sub, (fan_in, fan_out), jnp.float32,
                               minval=-bound, maxval=bound)
        b = jnp.ones((1, fan_out), jnp.float32)
        params.append((W, b))
    return params


def prepare_params(params):
    """Pack / zero-pad / pre-cast params for the fused kernel (once, off-device path).

    Hidden width is padded to a multiple of 128 (lane-dense tiles). Padded
    weight columns/rows and padded biases are ZERO, so padded units are exactly
    0 after every ReLU and never leak into the real output column."""
    W1, b1 = params[0]
    hidden = params[1:-1]
    WL, bL = params[-1]
    w = W1.shape[1]
    w_pad = _round_up(w, 128)

    w1 = jnp.zeros((5, w_pad), jnp.bfloat16).at[:, :w].set(W1.astype(jnp.bfloat16))
    b1p = jnp.zeros((1, w_pad), jnp.float32).at[:, :w].set(b1.astype(jnp.float32))

    n_hidden = len(hidden)
    if n_hidden > 0:
        wh = jnp.zeros((n_hidden, w_pad, w_pad), jnp.bfloat16)
        bh = jnp.zeros((n_hidden, 1, w_pad), jnp.float32)
        for i, (W, b) in enumerate(hidden):
            wh = wh.at[i, :w, :w].set(W.astype(jnp.bfloat16))
            bh = bh.at[i, :, :w].set(b.astype(jnp.float32))
    else:  # d == 1: dummies (loop skipped, never read)
        wh = jnp.zeros((1, w_pad, w_pad), jnp.bfloat16)
        bh = jnp.zeros((1, 1, w_pad), jnp.float32)

    # Final layer stored as a (1, w_pad) ROW so the kernel emits a (1, TILE_N)
    # lane-dense-in-batch result; bias is a single SMEM scalar.
    wl = jnp.zeros((1, w_pad), jnp.bfloat16).at[0, :w].set(
        WL[:, 0].astype(jnp.bfloat16))
    bl = bL.reshape(-1)[:1].astype(jnp.float32)          # shape (1,)
    return (w1, b1p, wh, bh, wl, bl), n_hidden


def net_forward(x, prepped, n_hidden):
    """Pallas implementation of Net.forward (mirrors np.float32(x.copy()) cast)."""
    x = jnp.asarray(x, jnp.float32)          # f32 straight in; kernel casts to bf16
    w1, b1, wh, bh, wl, bl = prepped
    return _run(x, w1, b1, wh, bh, wl, bl, n_hidden=n_hidden)


def _reference_forward(x, params):
    """Pure-JAX f32 reference of Net.forward for validation."""
    h = jnp.asarray(x, jnp.float32)
    for i, (W, b) in enumerate(params):
        h = h @ W + b
        if i < len(params) - 1:
            h = jnp.maximum(h, 0.0)
    return h


if __name__ == "__main__":
    # TODO(synk): Net.train (Adam + MSE training loop) is not translated; forward only.
    key = jax.random.PRNGKey(0)
    w, d = 32, 3           # layers: 5->32, 32->32, 32->32, 32->1
    batch = 128

    pkey, xkey = jax.random.split(key)
    params = init_net_params(pkey, w, d)
    prepped, n_hidden = prepare_params(params)
    x = jax.random.normal(xkey, (batch, 5), jnp.float32)

    out = net_forward(x, prepped, n_hidden)
    out = jax.block_until_ready(out)

    assert out.shape == (batch, 1) and out.dtype == jnp.float32
    assert bool(jnp.all(jnp.isfinite(out)))

    ref = _reference_forward(x, params)
    assert bool(jnp.allclose(out, ref, rtol=1e-1, atol=1e-1)), (
        "mismatch vs f32 reference")
    print("KERNEL_OK")
</pallas_src>

<mosaic_0001>
module attributes {stable_mosaic.version = 11 : i64} {
  func.func @_mlp_kernel(%arg0: i32, %arg1: memref<128x5xf32, #tpu.memory_space<vmem>>, %arg2: memref<5x128xbf16, #tpu.memory_space<vmem>>, %arg3: memref<1x128xf32, #tpu.memory_space<vmem>>, %arg4: memref<2x128x128xbf16, #tpu.memory_space<vmem>>, %arg5: memref<2x1x128xf32, #tpu.memory_space<vmem>>, %arg6: memref<1x128xbf16, #tpu.memory_space<vmem>>, %arg7: memref<1xf32, #tpu.memory_space<smem>>, %arg8: memref<1x128xf32, #tpu.memory_space<vmem>>) attributes {dimension_semantics = [#tpu.dimension_semantics<parallel>], iteration_bounds = array<i64: 1>, scalar_prefetch = 0 : i64, scratch_operands = 0 : i64, tpu.core_type = #tpu.core_type<tc>, window_params = [{transform_indices = @transform_0, window_bounds = array<i64: 128, 5>}, {pipeline_mode = #tpu.pipeline_mode<synchronous>, transform_indices = @transform_1, window_bounds = array<i64: 5, 128>}, {pipeline_mode = #tpu.pipeline_mode<synchronous>, transform_indices = @transform_2, window_bounds = array<i64: 1, 128>}, {pipeline_mode = #tpu.pipeline_mode<synchronous>, transform_indices = @transform_3, window_bounds = array<i64: 2, 128, 128>}, {pipeline_mode = #tpu.pipeline_mode<synchronous>, transform_indices = @transform_4, window_bounds = array<i64: 2, 1, 128>}, {pipeline_mode = #tpu.pipeline_mode<synchronous>, transform_indices = @transform_5, window_bounds = array<i64: 1, 128>}, {transform_indices = @transform_6, window_bounds = array<i64: 1>}, {transform_indices = @transform_7, window_bounds = array<i64: 1, 128>}]} {
    %c0 = arith.constant 0 : index
    %c0_0 = arith.constant 0 : index
    %0 = vector.load %arg1[%c0, %c0_0] : memref<128x5xf32, #tpu.memory_space<vmem>>, vector<128x5xf32>
    %1 = arith.truncf %0 : vector<128x5xf32> to vector<128x5xbf16>
    %c0_1 = arith.constant 0 : index
    %c0_2 = arith.constant 0 : index
    %2 = vector.load %arg2[%c0_1, %c0_2] : memref<5x128xbf16, #tpu.memory_space<vmem>>, vector<5x128xbf16>
    %cst = arith.constant dense<0.000000e+00> : vector<128x128xf32>
    %3 = tpu.matmul %1, %2, %cst {dimension_numbers = #tpu.dot_dimension_numbers<[1], [0], [0], [1], [0, 0, 1, 1], [], []>} : vector<128x5xbf16>, vector<5x128xbf16>, vector<128x128xf32> -> vector<128x128xf32>
    %c0_3 = arith.constant 0 : index
    %c0_4 = arith.constant 0 : index
    %4 = vector.load %arg3[%c0_3, %c0_4] : memref<1x128xf32, #tpu.memory_space<vmem>>, vector<1x128xf32>
    %5 = vector.broadcast %4 : vector<1x128xf32> to vector<128x128xf32>
    %6 = arith.addf %3, %5 : vector<128x128xf32>
    %cst_5 = arith.constant 0.000000e+00 : f32
    %7 = vector.broadcast %cst_5 : f32 to vector<128x128xf32>
    %8 = arith.maximumf %6, %7 : vector<128x128xf32>
    %9 = arith.truncf %8 : vector<128x128xf32> to vector<128x128xbf16>
    %c0_6 = arith.constant 0 : index
    %c0_7 = arith.constant 0 : index
    %c0_8 = arith.constant 0 : index
    %10 = vector.load %arg4[%c0_6, %c0_7, %c0_8] : memref<2x128x128xbf16, #tpu.memory_space<vmem>>, vector<1x128x128xbf16>
    %11 = vector.shape_cast %10 : vector<1x128x128xbf16> to vector<128x128xbf16>
    %cst_9 = arith.constant dense<0.000000e+00> : vector<128x128xf32>
    %12 = tpu.matmul %9, %11, %cst_9 {dimension_numbers = #tpu.dot_dimension_numbers<[1], [0], [0], [1], [0, 0, 1, 1], [], []>} : vector<128x128xbf16>, vector<128x128xbf16>, vector<128x128xf32> -> vector<128x128xf32>
    %c0_10 = arith.constant 0 : index
    %c0_11 = arith.constant 0 : index
    %c0_12 = arith.constant 0 : index
    %13 = vector.load %arg5[%c0_10, %c0_11, %c0_12] : memref<2x1x128xf32, #tpu.memory_space<vmem>>, vector<1x1x128xf32>
    %14 = vector.shape_cast %13 : vector<1x1x128xf32> to vector<1x128xf32>
    %15 = vector.broadcast %14 : vector<1x128xf32> to vector<128x128xf32>
    %16 = arith.addf %12, %15 : vector<128x128xf32>
    %cst_13 = arith.constant 0.000000e+00 : f32
    %17 = vector.broadcast %cst_13 : f32 to vector<128x128xf32>
    %18 = arith.maximumf %16, %17 : vector<128x128xf32>
    %19 = arith.truncf %18 : vector<128x128xf32> to vector<128x128xbf16>
    %c1 = arith.constant 1 : index
    %c0_14 = arith.constant 0 : index
    %c0_15 = arith.constant 0 : index
    %20 = vector.load %arg4[%c1, %c0_14, %c0_15] : memref<2x128x128xbf16, #tpu.memory_space<vmem>>, vector<1x128x128xbf16>
    %21 = vector.shape_cast %20 : vector<1x128x128xbf16> to vector<128x128xbf16>
    %cst_16 = arith.constant dense<0.000000e+00> : vector<128x128xf32>
    %22 = tpu.matmul %19, %21, %cst_16 {dimension_numbers = #tpu.dot_dimension_numbers<[1], [0], [0], [1], [0, 0, 1, 1], [], []>} : vector<128x128xbf16>, vector<128x128xbf16>, vector<128x128xf32> -> vector<128x128xf32>
    %c1_17 = arith.constant 1 : index
    %c0_18 = arith.constant 0 : index
    %c0_19 = arith.constant 0 : index
    %23 = vector.load %arg5[%c1_17, %c0_18, %c0_19] : memref<2x1x128xf32, #tpu.memory_space<vmem>>, vector<1x1x128xf32>
    %24 = vector.shape_cast %23 : vector<1x1x128xf32> to vector<1x128xf32>
    %25 = vector.broadcast %24 : vector<1x128xf32> to vector<128x128xf32>
    %26 = arith.addf %22, %25 : vector<128x128xf32>
    %cst_20 = arith.constant 0.000000e+00 : f32
    %27 = vector.broadcast %cst_20 : f32 to vector<128x128xf32>
    %28 = arith.maximumf %26, %27 : vector<128x128xf32>
    %29 = tpu.transpose %28, [1, 0] : vector<128x128xf32> -> vector<128x128xf32>
    %30 = arith.truncf %29 : vector<128x128xf32> to vector<128x128xbf16>
    %c0_21 = arith.constant 0 : index
    %c0_22 = arith.constant 0 : index
    %31 = vector.load %arg6[%c0_21, %c0_22] : memref<1x128xbf16, #tpu.memory_space<vmem>>, vector<1x128xbf16>
    %cst_23 = arith.constant dense<0.000000e+00> : vector<1x128xf32>
    %32 = tpu.matmul %31, %30, %cst_23 {dimension_numbers = #tpu.dot_dimension_numbers<[1], [0], [0], [1], [0, 0, 1, 1], [], []>} : vector<1x128xbf16>, vector<128x128xbf16>, vector<1x128xf32> -> vector<1x128xf32>
    %c0_24 = arith.constant 0 : index
    %33 = memref.load %arg7[%c0_24] : memref<1xf32, #tpu.memory_space<smem>>
    %34 = vector.broadcast %33 : f32 to vector<1x128xf32>
    %35 = arith.addf %32, %34 : vector<1x128xf32>
    %c0_25 = arith.constant 0 : index
    %c0_26 = arith.constant 0 : index
    %36 = vector.load %arg8[%c0_25, %c0_26] : memref<1x128xf32, #tpu.memory_space<vmem>>, vector<1x128xf32>
    tpu.vector_store %arg8[%c0_25, %c0_26], %35 {strides = array<i32>} : memref<1x128xf32, #tpu.memory_space<vmem>>, vector<1x128xf32>,
    return
  }
  func.func @transform_0(%arg0: i32) -> (i32, i32) {
    %c0_i32 = arith.constant 0 : i32
    %c0_i32_0 = arith.constant 0 : i32
    return %arg0, %c0_i32 : i32, i32
  }
  func.func @transform_1(%arg0: i32) -> (i32, i32) {
    %c0_i32 = arith.constant 0 : i32
    %c0_i32_0 = arith.constant 0 : i32
    %c0_i32_1 = arith.constant 0 : i32
    return %c0_i32, %c0_i32_0 : i32, i32
  }
  func.func @transform_2(%arg0: i32) -> (i32, i32) {
    %c0_i32 = arith.constant 0 : i32
    %c0_i32_0 = arith.constant 0 : i32
    %c0_i32_1 = arith.constant 0 : i32
    return %c0_i32, %c0_i32_0 : i32, i32
  }
  func.func @transform_3(%arg0: i32) -> (i32, i32, i32) {
    %c0_i32 = arith.constant 0 : i32
    %c0_i32_0 = arith.constant 0 : i32
    %c0_i32_1 = arith.constant 0 : i32
    %c0_i32_2 = arith.constant 0 : i32
    return %c0_i32, %c0_i32_0, %c0_i32_1 : i32, i32, i32
  }
  func.func @transform_4(%arg0: i32) -> (i32, i32, i32) {
    %c0_i32 = arith.constant 0 : i32
    %c0_i32_0 = arith.constant 0 : i32
    %c0_i32_1 = arith.constant 0 : i32
    %c0_i32_2 = arith.constant 0 : i32
    return %c0_i32, %c0_i32_0, %c0_i32_1 : i32, i32, i32
  }
  func.func @transform_5(%arg0: i32) -> (i32, i32) {
    %c0_i32 = arith.constant 0 : i32
    %c0_i32_0 = arith.constant 0 : i32
    %c0_i32_1 = arith.constant 0 : i32
    return %c0_i32, %c0_i32_0 : i32, i32
  }
  func.func @transform_6(%arg0: i32) -> i32 {
    %c0_i32 = arith.constant 0 : i32
    %c0_i32_0 = arith.constant 0 : i32
    return %c0_i32 : i32
  }
  func.func @transform_7(%arg0: i32) -> (i32, i32) {
    %c0_i32 = arith.constant 0 : i32
    %c0_i32_0 = arith.constant 0 : i32
    return %c0_i32, %arg0 : i32, i32
  }
}

</mosaic_0001>

<bundles_post_ra>
// kernel: _run.1
= control target key start
LH: loop header
LB: loop body
LE: loop exit
PB: predicated region body
PF: predicated region fallthrough
CT: control target
= control target key end

     0   :  { %vm83_vm0 = vcmask 1041408   ;;  %vm84_vm1 = vcmask 1042432   ;;  %v664_v1 = vmov 65535   ;;  %s849_s0 = inlined_call_operand.vmem [shape: f32[128,5], index: 0, kind: input, shape index: {}]   ;;  %s850_s1 = inlined_call_operand.vmem [shape: bf16[5,128], index: 1, kind: input, shape index: {}]   ;;  %s851_s2 = inlined_call_operand.vmem [shape: f32[1,128], index: 2, kind: input, shape index: {}]   ;;  %s852_s3 = inlined_call_operand.vmem [shape: bf16[2,128,128], index: 3, kind: input, shape index: {}]   ;;  %s853_s4 = inlined_call_operand.vmem [shape: f32[2,1,128], index: 4, kind: input, shape index: {}]   ;;  %s854_s5 = inlined_call_operand.vmem [shape: bf16[1,128], index: 5, kind: input, shape index: {}]   ;;  %s855_s6 = inlined_call_operand.<no memory space> [shape: f32[1], index: 6, kind: input, shape index: {}]   ;;  %s856_s7 = inlined_call_operand.hbm [shape: f32[1,128], index: 7, kind: output, shape index: {}]  }
   0x1   :  { %v53_v0 = vld [vmem:[%s850_s1] sm:$0x7]  ;;  %v85_v2 = vsel %vm83_vm0, 4294967295, %v664_v1  ;;  %v30_v4 = vld [vmem:[%s849_s0 + $0x8] sm:$0xff] }
   0x2   :  { %v29_v3 = vld [vmem:[%s849_s0] sm:$0xff]  ;;  %v86_v5 = vsel %vm84_vm1, %v85_v2, 0 }
   0x3   :  { %v88_v6 = vand.u32 %v86_v5, %v53_v0 }
   0x4   :  { %13 = vsyncpa [#allocation4], 0  ;;  %v45_v7 = vpack.c.bf16 %v30_v4, %v29_v3  ;;  %vm58_vm2 = vcmask 39936   ;;  %v31_v8 = vld [vmem:[%s849_s0 + $0x10] sm:$0xff]  ;;  %v32_v9 = vld [vmem:[%s849_s0 + $0x18] sm:$0xff]  ;;  %s665_s24 = smov [#allocation3]  }
   0x5   :  { %97 = vmatpush.bf16.msra.mxu0 %v88_v6  ;;  %v46_v10 = vpack.c.bf16 %v32_v9, %v31_v8  ;;  %v33_v11 = vld [vmem:[%s849_s0 + $0x20] sm:$0xff]  ;;  %v34_v12 = vld [vmem:[%s849_s0 + $0x28] sm:$0xff]  ;;  %v35_v14 = vld [vmem:[%s849_s0 + $0x30] sm:$0xff]  ;;  %s501_s25 = sshll.u32 %s665_s24, 4  ;;  %s502_s25 = int_to_ptr.vmem [resolvable:$true] %s501_s25 }
   0x6   :  { %v47_v13 = vpack.c.bf16 %v34_v12, %v33_v11  ;;  %v36_v15 = vld [vmem:[%s849_s0 + $0x38] sm:$0xff]  ;;  %v37_v17 = vld [vmem:[%s849_s0 + $0x40] sm:$0xff]  ;;  %v38_v18 = vld [vmem:[%s849_s0 + $0x48] sm:$0xff] }
   0x7   :  { %v48_v16 = vpack.c.bf16 %v36_v15, %v35_v14  ;;  %v49_v19 = vpack.c.bf16 %v38_v18, %v37_v17  ;;  %v608_v20 = vld [vmem:[%s852_s3 + $0x38] sm:$0xff]  ;;  %v39_v21 = vld [vmem:[%s849_s0 + $0x50] sm:$0xff]  ;;  %v606_v25 = vld [vmem:[%s852_s3 + $0x28] sm:$0xff] }
   0x8   :  { %512 = vmatmul.msk.bf16.vlgmr.msra.gmra.mxu0 %vm58_vm2, %v45_v7  ;;  %231 = vmatpush.bf16.msra.mxu1 %v608_v20  ;;  %v40_v22 = vld [vmem:[%s849_s0 + $0x58] sm:$0xff]  ;;  %v607_v24 = vld [vmem:[%s852_s3 + $0x30] sm:$0xff]  ;;  %v605_v26 = vld [vmem:[%s852_s3 + $0x20] sm:$0xff] }
   0x9   :  { %617 = vmatpush.bf16.msra.mxu3 %v608_v20  ;;  %v50_v23 = vpack.c.bf16 %v40_v22, %v39_v21  ;;  %v41_v27 = vld [vmem:[%s849_s0 + $0x60] sm:$0xff]  ;;  %v42_v28 = vld [vmem:[%s849_s0 + $0x68] sm:$0xff]  ;;  %v604_v29 = vld [vmem:[%s852_s3 + $0x18] sm:$0xff] }
   0xa   :  { %v51_v30 = vpack.c.bf16 %v42_v28, %v41_v27  ;;  %v603_v31 = vld [vmem:[%s852_s3 + $0x10] sm:$0xff]  ;;  %v602_v32 = vld [vmem:[%s852_s3 + $0x8] sm:$0xff]  ;;  %v601_v33 = vld [vmem:[%s852_s3] sm:$0xff] }
   0xb   :  { %v43_v34 = vld [vmem:[%s849_s0 + $0x70] sm:$0xff]  ;;  %v44_v35 = vld [vmem:[%s849_s0 + $0x78] sm:$0xff]  ;;  %v792_v38 = vld [vmem:[%s851_s2] ss:$0 sm:$0xff]  ;;  %s503_s0 = sshll.u32 %s856_s7, 4  ;;  %s504_s0 = int_to_ptr.hbm [resolvable:$true] %s503_s0 }
   0xc   :  { %232 = vmatpush.bf16.msra.mxu1 %v607_v24  ;;  %v52_v36 = vpack.c.bf16 %v44_v35, %v43_v34  ;;  %v615_v17 = vld [vmem:[%s852_s3 + $0x70] sm:$0xff]  ;;  %v613_v20 = vld [vmem:[%s852_s3 + $0x60] sm:$0xff] }
   0xd   :  { %618 = vmatpush.bf16.msra.mxu3 %v607_v24  ;;  %v612_v24 = vld [vmem:[%s852_s3 + $0x58] sm:$0xff]  ;;  %v611_v28 = vld [vmem:[%s852_s3 + $0x50] sm:$0xff] }
  0x10   :  { %233 = vmatpush.bf16.msra.mxu1 %v606_v25 }
  0x11   :  { %619 = vmatpush.bf16.msra.mxu3 %v606_v25 }
  0x14   :  { %234 = vmatpush.bf16.msra.mxu1 %v605_v26 }
  0x15   :  { %620 = vmatpush.bf16.msra.mxu3 %v605_v26 }
  0x18   :  { %513 = vmatmul.msk.bf16.gmra.mxu0 %vm58_vm2, %v46_v10  ;;  %235 = vmatpush.bf16.msra.mxu1 %v604_v29 }
  0x19   :  { %621 = vmatpush.bf16.msra.mxu3 %v604_v29 }
  0x1c   :  { %236 = vmatpush.bf16.msra.mxu1 %v603_v31 }
  0x1d   :  { %622 = vmatpush.bf16.msra.mxu3 %v603_v31  ;;  %v609_v31 = vld [vmem:[%s852_s3 + $0x40] sm:$0xff] }
  0x20   :  { %237 = vmatpush.bf16.msra.mxu1 %v602_v32 }
  0x21   :  { %623 = vmatpush.bf16.msra.mxu3 %v602_v32 }
  0x24   :  { %238 = vmatpush.bf16.msra.mxu1 %v601_v33 }
  0x25   :  { %624 = vmatpush.bf16.msra.mxu3 %v601_v33 }
  0x28   :  { %514 = vmatmul.msk.bf16.gmra.mxu0 %vm58_vm2, %v47_v13  ;;  %v616_v13 = vld [vmem:[%s852_s3 + $0x78] sm:$0xff] }
  0x29   :  { %374 = vmatpush.bf16.msra.mxu2 %v616_v13  ;;  %625 = vmatpush.bf16.msrb.mxu3 %v616_v13 }
  0x2d   :  { %375 = vmatpush.bf16.msra.mxu2 %v615_v17  ;;  %626 = vmatpush.bf16.msrb.mxu3 %v615_v17 }
  0x38   :  { %515 = vmatmul.msk.bf16.gmra.mxu0 %vm58_vm2, %v48_v16 }
  0x48   :  { %516 = vmatmul.msk.bf16.gmra.mxu0 %vm58_vm2, %v49_v19  ;;  %v614_v19 = vld [vmem:[%s852_s3 + $0x68] sm:$0xff] }
  0x49   :  { %376 = vmatpush.bf16.msra.mxu2 %v614_v19  ;;  %627 = vmatpush.bf16.msrb.mxu3 %v614_v19 }
  0x4d   :  { %377 = vmatpush.bf16.msra.mxu2 %v613_v20  ;;  %628 = vmatpush.bf16.msrb.mxu3 %v613_v20 }
  0x51   :  { %378 = vmatpush.bf16.msra.mxu2 %v612_v24  ;;  %629 = vmatpush.bf16.msrb.mxu3 %v612_v24 }
  0x55   :  { %379 = vmatpush.bf16.msra.mxu2 %v611_v28  ;;  %630 = vmatpush.bf16.msrb.mxu3 %v611_v28 }
  0x58   :  { %517 = vmatmul.msk.bf16.gmra.mxu0 %vm58_vm2, %v50_v23 }
  0x68   :  { %518 = vmatmul.msk.bf16.gmra.mxu0 %vm58_vm2, %v51_v30  ;;  %v610_v30 = vld [vmem:[%s852_s3 + $0x48] sm:$0xff] }
  0x69   :  { %380 = vmatpush.bf16.msra.mxu2 %v610_v30  ;;  %631 = vmatpush.bf16.msrb.mxu3 %v610_v30 }
  0x6d   :  { %381 = vmatpush.bf16.msra.mxu2 %v609_v31  ;;  %632 = vmatpush.bf16.msrb.mxu3 %v609_v31  ;;  %v637_v31 = vld [vmem:[%s853_s4 + $0x1] ss:$0 sm:$0xff] }
  0x78   :  { %519 = vmatmul.msk.bf16.gmra.mxu0 %vm58_vm2, %v52_v36 }
  0x85   :  { %v99_v37 = vpop.f32.mrf.mxu0 }
  0x86   :  { %v100_v39 = vadd.f32 %v792_v38, %v99_v37 }
  0x88   :  { %v139_v42 = vmax.f32 %v100_v39, 0.0 }
  0x8d   :  { %v101_v40 = vpop.f32.mrf.mxu0 }
  0x8e   :  { %v102_v41 = vadd.f32 %v792_v38, %v101_v40  ;;  %v636_v40 = vld [vmem:[%s853_s4] ss:$0 sm:$0xff] }
  0x90   :  { %v140_v43 = vmax.f32 %v102_v41, 0.0 }
  0x92   :  { %v155_v44 = vpack.c.bf16 %v140_v43, %v139_v42 }
  0x94   :  { %239 = vmatmul.bf16.vlgmr.msra.gmra.mxu1 %v155_v44 }
  0x95   :  { %v104_v45 = vpop.f32.mrf.mxu0 }
  0x96   :  { %v105_v46 = vadd.f32 %v792_v38, %v104_v45 }
  0x98   :  { %v141_v49 = vmax.f32 %v105_v46, 0.0 }
  0x9d   :  { %v106_v47 = vpop.f32.mrf.mxu0 }
  0x9e   :  { %v107_v48 = vadd.f32 %v792_v38, %v106_v47 }
  0xa0   :  { %v142_v50 = vmax.f32 %v107_v48, 0.0 }
  0xa2   :  { %v156_v51 = vpack.c.bf16 %v142_v50, %v141_v49 }
  0xa4   :  { %244 = vmatmul.bf16.gmra.mxu1 %v156_v51 }
  0xa5   :  { %v109_v52 = vpop.f32.mrf.mxu0 }
  0xa6   :  { %v110_v53 = vadd.f32 %v792_v38, %v109_v52 }
  0xa8   :  { %v143_v56 = vmax.f32 %v110_v53, 0.0 }
  0xad   :  { %v111_v54 = vpop.f32.mrf.mxu0 }
  0xae   :  { %v112_v55 = vadd.f32 %v792_v38, %v111_v54 }
  0xb0   :  { %v144_v57 = vmax.f32 %v112_v55, 0.0 }
  0xb2   :  { %v157_v58 = vpack.c.bf16 %v144_v57, %v143_v56 }
  0xb4   :  { %249 = vmatmul.bf16.gmra.mxu1 %v157_v58 }
  0xb5   :  { %v114_v59 = vpop.f32.mrf.mxu0 }
  0xb6   :  { %v115_v60 = vadd.f32 %v792_v38, %v114_v59 }
  0xb8   :  { %v145_v63 = vmax.f32 %v115_v60, 0.0 }
  0xbd   :  { %v116_v61 = vpop.f32.mrf.mxu0 }
  0xbe   :  { %v117_v62 = vadd.f32 %v792_v38, %v116_v61 }
  0xc0   :  { %v146_v0 = vmax.f32 %v117_v62, 0.0 }
  0xc2   :  { %v158_v1 = vpack.c.bf16 %v146_v0, %v145_v63 }
  0xc4   :  { %254 = vmatmul.bf16.gmra.mxu1 %v158_v1 }
  0xc5   :  { %v119_v2 = vpop.f32.mrf.mxu0 }
  0xc6   :  { %v120_v3 = vadd.f32 %v792_v38, %v119_v2 }
  0xc8   :  { %v147_v6 = vmax.f32 %v120_v3, 0.0 }
  0xcd   :  { %v121_v4 = vpop.f32.mrf.mxu0 }
  0xce   :  { %v122_v5 = vadd.f32 %v792_v38, %v121_v4 }
  0xd0   :  { %v148_v7 = vmax.f32 %v122_v5, 0.0 }
  0xd2   :  { %v159_v8 = vpack.c.bf16 %v148_v7, %v147_v6 }
  0xd4   :  { %259 = vmatmul.bf16.gmra.mxu1 %v159_v8 }
  0xd5   :  { %v124_v9 = vpop.f32.mrf.mxu0 }
  0xd6   :  { %v125_v10 = vadd.f32 %v792_v38, %v124_v9 }
  0xd8   :  { %v149_v14 = vmax.f32 %v125_v10, 0.0 }
  0xdd   :  { %v126_v11 = vpop.f32.mrf.mxu0 }
  0xde   :  { %v127_v12 = vadd.f32 %v792_v38, %v126_v11 }
  0xe0   :  { %v150_v15 = vmax.f32 %v127_v12, 0.0 }
  0xe2   :  { %v160_v16 = vpack.c.bf16 %v150_v15, %v149_v14 }
  0xe4   :  { %264 = vmatmul.bf16.gmra.mxu1 %v160_v16 }
  0xe5   :  { %v129_v18 = vpop.f32.mrf.mxu0 }
  0xe6   :  { %v130_v21 = vadd.f32 %v792_v38, %v129_v18 }
  0xe8   :  { %v151_v25 = vmax.f32 %v130_v21, 0.0 }
  0xed   :  { %v131_v22 = vpop.f32.mrf.mxu0 }
  0xee   :  { %v132_v23 = vadd.f32 %v792_v38, %v131_v22 }
  0xf0   :  { %v152_v26 = vmax.f32 %v132_v23, 0.0 }
  0xf2   :  { %v161_v27 = vpack.c.bf16 %v152_v26, %v151_v25 }
  0xf4   :  { %269 = vmatmul.bf16.vlgmr.msra.gmra.mxu3 %v161_v27 }
  0xf5   :  { %v134_v29 = vpop.f32.mrf.mxu0 }
  0xf6   :  { %v135_v32 = vadd.f32 %v792_v38, %v134_v29 }
  0xf8   :  { %v153_v35 = vmax.f32 %v135_v32, 0.0 }
  0xfd   :  { %v136_v33 = vpop.f32.mrf.mxu0 }
  0xfe   :  { %v137_v34 = vadd.f32 %v792_v38, %v136_v33 }
 0x100   :  { %v154_v36 = vmax.f32 %v137_v34, 0.0 }
 0x102   :  { %v162_v37 = vpack.c.bf16 %v154_v36, %v153_v35 }
 0x104   :  { %274 = vmatmul.bf16.gmra.mxu3 %v162_v37 }
 0x111   :  { %v240_v39 = vpop.f32.mrf.mxu1 }
 0x112   :  { %v241_v41 = vadd.f32 %v636_v40, %v240_v39 }
 0x114   :  { %v280_v44 = vmax.f32 %v241_v41, 0.0 }
 0x119   :  { %v242_v42 = vpop.f32.mrf.mxu1 }
 0x11a   :  { %v243_v43 = vadd.f32 %v636_v40, %v242_v42 }
 0x11c   :  { %v281_v45 = vmax.f32 %v243_v43, 0.0 }
 0x11e   :  { %v296_v46 = vpack.c.bf16 %v281_v45, %v280_v44 }
 0x120   :  { %382 = vmatmul.bf16.vlgmr.msra.gmra.mxu2 %v296_v46 }
 0x121   :  { %v245_v47 = vpop.f32.mrf.mxu1 }
 0x122   :  { %v246_v48 = vadd.f32 %v636_v40, %v245_v47 }
 0x124   :  { %v282_v50 = vmax.f32 %v246_v48, 0.0 }
 0x129   :  { %v247_v49 = vpop.f32.mrf.mxu1 }
 0x12a   :  { %v248_v38 = vadd.f32 %v636_v40, %v247_v49 }
 0x12c   :  { %v283_v51 = vmax.f32 %v248_v38, 0.0 }
 0x12e   :  { %v297_v52 = vpack.c.bf16 %v283_v51, %v282_v50 }
 0x130   :  { %387 = vmatmul.bf16.gmra.mxu2 %v297_v52 }
 0x131   :  { %v250_v53 = vpop.f32.mrf.mxu1 }
 0x132   :  { %v251_v54 = vadd.f32 %v636_v40, %v250_v53 }
 0x134   :  { %v284_v57 = vmax.f32 %v251_v54, 0.0 }
 0x139   :  { %v252_v55 = vpop.f32.mrf.mxu1 }
 0x13a   :  { %v253_v56 = vadd.f32 %v636_v40, %v252_v55 }
 0x13c   :  { %v285_v58 = vmax.f32 %v253_v56, 0.0 }
 0x13e   :  { %v298_v59 = vpack.c.bf16 %v285_v58, %v284_v57 }
 0x140   :  { %392 = vmatmul.bf16.gmra.mxu2 %v298_v59 }
 0x141   :  { %v255_v60 = vpop.f32.mrf.mxu1 }
 0x142   :  { %v256_v61 = vadd.f32 %v636_v40, %v255_v60 }
 0x144   :  { %v286_v0 = vmax.f32 %v256_v61, 0.0 }
 0x149   :  { %v257_v62 = vpop.f32.mrf.mxu1 }
 0x14a   :  { %v258_v63 = vadd.f32 %v636_v40, %v257_v62 }
 0x14c   :  { %v287_v1 = vmax.f32 %v258_v63, 0.0 }
 0x14e   :  { %v299_v2 = vpack.c.bf16 %v287_v1, %v286_v0 }
 0x150   :  { %397 = vmatmul.bf16.gmra.mxu2 %v299_v2 }
 0x151   :  { %v260_v3 = vpop.f32.mrf.mxu1 }
 0x152   :  { %v261_v4 = vadd.f32 %v636_v40, %v260_v3 }
 0x154   :  { %v288_v7 = vmax.f32 %v261_v4, 0.0 }
 0x159   :  { %v262_v5 = vpop.f32.mrf.mxu1 }
 0x15a   :  { %v263_v6 = vadd.f32 %v636_v40, %v262_v5 }
 0x15c   :  { %v289_v8 = vmax.f32 %v263_v6, 0.0 }
 0x15e   :  { %v300_v9 = vpack.c.bf16 %v289_v8, %v288_v7 }
 0x160   :  { %402 = vmatmul.bf16.gmra.mxu2 %v300_v9 }
 0x161   :  { %v265_v10 = vpop.f32.mrf.mxu1 }
 0x162   :  { %v266_v11 = vadd.f32 %v636_v40, %v265_v10 }
 0x164   :  { %v290_v14 = vmax.f32 %v266_v11, 0.0 }
 0x169   :  { %v267_v12 = vpop.f32.mrf.mxu1 }
 0x16a   :  { %v268_v13 = vadd.f32 %v636_v40, %v267_v12 }
 0x16c   :  { %v291_v15 = vmax.f32 %v268_v13, 0.0 }
 0x16e   :  { %v301_v16 = vpack.c.bf16 %v291_v15, %v290_v14 }
 0x170   :  { %407 = vmatmul.bf16.gmra.mxu2 %v301_v16 }
 0x177   :  { %v270_v17 = vpop.f32.mrf.mxu3 }
 0x178   :  { %v271_v18 = vadd.f32 %v636_v40, %v270_v17 }
 0x17a   :  { %v292_v21 = vmax.f32 %v271_v18, 0.0 }
 0x17f   :  { %v272_v19 = vpop.f32.mrf.mxu3 }
 0x180   :  { %v273_v20 = vadd.f32 %v636_v40, %v272_v19 }
 0x182   :  { %v293_v22 = vmax.f32 %v273_v20, 0.0 }
 0x184   :  { %v302_v23 = vpack.c.bf16 %v293_v22, %v292_v21 }
 0x186   :  { %412 = vmatmul.bf16.vlgmr.msrb.gmra.mxu3 %v302_v23 }
 0x187   :  { %v275_v24 = vpop.f32.mrf.mxu3 }
 0x188   :  { %v276_v25 = vadd.f32 %v636_v40, %v275_v24 }
 0x18a   :  { %v294_v28 = vmax.f32 %v276_v25, 0.0 }
 0x18f   :  { %v277_v26 = vpop.f32.mrf.mxu3 }
 0x190   :  { %v278_v27 = vadd.f32 %v636_v40, %v277_v26 }
 0x192   :  { %v295_v29 = vmax.f32 %v278_v27, 0.0 }
 0x194   :  { %v303_v30 = vpack.c.bf16 %v295_v29, %v294_v28 }
 0x196   :  { %417 = vmatmul.bf16.gmra.mxu3 %v303_v30 }
 0x1a3   :  { %v383_v32 = vpop.f32.mrf.mxu2 }
 0x1a4   :  { %v384_v33 = vadd.f32 %v637_v31, %v383_v32 }
 0x1a6   :  { %v423_v34 = vmax.f32 %v384_v33, 0.0 }
 0x1a8   :  { %439 = vxpose.xlu0.b32.start [1/16] %v423_v34, 128 }
 0x1ab   :  { %v385_v35 = vpop.f32.mrf.mxu2 }
 0x1ac   :  { %v386_v36 = vadd.f32 %v637_v31, %v385_v35 }
 0x1ae   :  { %v424_v37 = vmax.f32 %v386_v36, 0.0 }
 0x1b0   :  { %440 = vxpose.xlu0.b32.cont [2/16] %v424_v37, 128 }
 0x1b3   :  { %v388_v39 = vpop.f32.mrf.mxu2 }
 0x1b4   :  { %v389_v41 = vadd.f32 %v637_v31, %v388_v39 }
 0x1b6   :  { %v425_v42 = vmax.f32 %v389_v41, 0.0 }
 0x1b8   :  { %441 = vxpose.xlu0.b32.cont [3/16] %v425_v42, 128  ;;  %v479_v42 = vld [vmem:[%s854_s5] sm:$0x1] }
 0x1bb   :  { %v390_v40 = vpop.f32.mrf.mxu2 }
 0x1bc   :  { %v391_v43 = vadd.f32 %v637_v31, %v390_v40  ;;  %v481_v40 = vstv %s855_s6 }
 0x1be   :  { %v426_v44 = vmax.f32 %v391_v43, 0.0 }
 0x1c0   :  { %442 = vxpose.xlu0.b32.cont [4/16] %v426_v44, 128 }
 0x1c3   :  { %v393_v45 = vpop.f32.mrf.mxu2 }
 0x1c4   :  { %v394_v46 = vadd.f32 %v637_v31, %v393_v45 }
 0x1c6   :  { %v427_v47 = vmax.f32 %v394_v46, 0.0 }
 0x1c8   :  { %443 = vxpose.xlu0.b32.cont [5/16] %v427_v47, 128 }
 0x1cb   :  { %v395_v48 = vpop.f32.mrf.mxu2 }
 0x1cc   :  { %v396_v49 = vadd.f32 %v637_v31, %v395_v48 }
 0x1ce   :  { %v428_v38 = vmax.f32 %v396_v49, 0.0 }
 0x1d0   :  { %444 = vxpose.xlu0.b32.cont [6/16] %v428_v38, 128 }
 0x1d3   :  { %v398_v50 = vpop.f32.mrf.mxu2 }
 0x1d4   :  { %v399_v51 = vadd.f32 %v637_v31, %v398_v50 }
 0x1d6   :  { %v429_v52 = vmax.f32 %v399_v51, 0.0 }
 0x1d8   :  { %445 = vxpose.xlu0.b32.cont [7/16] %v429_v52, 128 }
 0x1db   :  { %v400_v53 = vpop.f32.mrf.mxu2 }
 0x1dc   :  { %v401_v54 = vadd.f32 %v637_v31, %v400_v53 }
 0x1de   :  { %v430_v55 = vmax.f32 %v401_v54, 0.0 }
 0x1e0   :  { %446 = vxpose.xlu0.b32.cont [8/16] %v430_v55, 128 }
 0x1e3   :  { %v403_v56 = vpop.f32.mrf.mxu2 }
 0x1e4   :  { %v404_v57 = vadd.f32 %v637_v31, %v403_v56 }
 0x1e6   :  { %v431_v58 = vmax.f32 %v404_v57, 0.0 }
 0x1e8   :  { %447 = vxpose.xlu0.b32.cont [9/16] %v431_v58, 128 }
 0x1eb   :  { %v405_v59 = vpop.f32.mrf.mxu2 }
 0x1ec   :  { %v406_v60 = vadd.f32 %v637_v31, %v405_v59 }
 0x1ee   :  { %v432_v61 = vmax.f32 %v406_v60, 0.0 }
 0x1f0   :  { %448 = vxpose.xlu0.b32.cont [10/16] %v432_v61, 128 }
 0x1f3   :  { %v408_v62 = vpop.f32.mrf.mxu2 }
 0x1f4   :  { %v409_v63 = vadd.f32 %v637_v31, %v408_v62 }
 0x1f6   :  { %v433_v0 = vmax.f32 %v409_v63, 0.0 }
 0x1f8   :  { %449 = vxpose.xlu0.b32.cont [11/16] %v433_v0, 128 }
 0x1fb   :  { %v410_v1 = vpop.f32.mrf.mxu2 }
 0x1fc   :  { %v411_v2 = vadd.f32 %v637_v31, %v410_v1 }
 0x1fe   :  { %v434_v3 = vmax.f32 %v411_v2, 0.0 }
 0x200   :  { %450 = vxpose.xlu0.b32.cont [12/16] %v434_v3, 128 }
 0x209   :  { %v413_v4 = vpop.f32.mrf.mxu3 }
 0x20a   :  { %v414_v5 = vadd.f32 %v637_v31, %v413_v4 }
 0x20c   :  { %v435_v6 = vmax.f32 %v414_v5, 0.0 }
 0x20e   :  { %451 = vxpose.xlu0.b32.cont [13/16] %v435_v6, 128 }
 0x211   :  { %v415_v7 = vpop.f32.mrf.mxu3 }
 0x212   :  { %v416_v8 = vadd.f32 %v637_v31, %v415_v7 }
 0x214   :  { %v436_v9 = vmax.f32 %v416_v8, 0.0 }
 0x216   :  { %452 = vxpose.xlu0.b32.cont [14/16] %v436_v9, 128 }
 0x219   :  { %v418_v10 = vpop.f32.mrf.mxu3 }
 0x21a   :  { %v419_v11 = vadd.f32 %v637_v31, %v418_v10 }
 0x21c   :  { %v437_v12 = vmax.f32 %v419_v11, 0.0 }
 0x21e   :  { %453 = vxpose.xlu0.b32.cont [15/16] %v437_v12, 128 }
 0x221   :  { %v420_v13 = vpop.f32.mrf.mxu3 }
 0x222   :  { %v421_v14 = vadd.f32 %v637_v31, %v420_v13 }
 0x224   :  { %v438_v15 = vmax.f32 %v421_v14, 0.0 }
 0x226   :  { %454 = vxpose.xlu0.b32.end [16/16] %v438_v15, 128 }
 0x252   :  { %v455_v16 = vpop.trf.xlu0 }
 0x25a   :  { %v456_v17 = vpop.trf.xlu0 }
 0x25b   :  { %v471_v18 = vpack.c.bf16 %v456_v17, %v455_v16 }
 0x262   :  { %v457_v19 = vpop.trf.xlu0 }
 0x26a   :  { %v458_v20 = vpop.trf.xlu0 }
 0x26b   :  { %v472_v21 = vpack.c.bf16 %v458_v20, %v457_v19 }
 0x272   :  { %v459_v22 = vpop.trf.xlu0 }
 0x27a   :  { %v460_v23 = vpop.trf.xlu0 }
 0x27b   :  { %v473_v24 = vpack.c.bf16 %v460_v23, %v459_v22 }
 0x282   :  { %v461_v25 = vpop.trf.xlu0 }
 0x28a   :  { %v462_v26 = vpop.trf.xlu0 }
 0x28b   :  { %v474_v27 = vpack.c.bf16 %v462_v26, %v461_v25 }
 0x292   :  { %v463_v28 = vpop.trf.xlu0 }
 0x29a   :  { %v464_v29 = vpop.trf.xlu0 }
 0x29b   :  { %v475_v41 = vpack.c.bf16 %v464_v29, %v463_v28 }
 0x2a2   :  { %v465_v30 = vpop.trf.xlu0 }
 0x2aa   :  { %v466_v32 = vpop.trf.xlu0 }
 0x2ab   :  { %v476_v39 = vpack.c.bf16 %v466_v32, %v465_v30 }
 0x2b2   :  { %v467_v33 = vpop.trf.xlu0 }
 0x2ba   :  { %v468_v31 = vpop.trf.xlu0 }
 0x2bb   :  { %v477_v37 = vpack.c.bf16 %v468_v31, %v467_v33 }
 0x2c2   :  { %v469_v34 = vpop.trf.xlu0 }
 0x2ca   :  { %v470_v35 = vpop.trf.xlu0 }
 0x2cb   :  { %v478_v36 = vpack.c.bf16 %v470_v35, %v469_v34 }
 0x2cd   :  { %482 = vmatpush.bf16.msra.mxu3 %v478_v36 }
 0x2d1   :  { %483 = vmatpush.bf16.msra.mxu3 %v477_v37 }
 0x2d5   :  { %484 = vmatpush.bf16.msra.mxu3 %v476_v39 }
 0x2d9   :  { %485 = vmatpush.bf16.msra.mxu3 %v475_v41 }
 0x2dd   :  { %486 = vmatpush.bf16.msra.mxu3 %v474_v27 }
 0x2e1   :  { %487 = vmatpush.bf16.msra.mxu3 %v473_v24 }
 0x2e5   :  { %488 = vmatpush.bf16.msra.mxu3 %v472_v21 }
 0x2e9   :  { %489 = vmatpush.bf16.msra.mxu3 %v471_v18 }
 0x2ec   :  { %490 = vmatmul.bf16.vlgmr.msra.gmra.mxu3 %v479_v42 }
 0x36f   :  { %v491_v43 = vpop.f32.mrf.mxu3 }
 0x370   :  { %v492_v44 = vadd.f32 %v491_v43, %v481_v40 }
 0x372   :  { %495 = vst [vmem:[#allocation3] sm:$0x1] %v492_v44 }
 0x373   :  { %506 = dma.vmem_to_hbm [thread:$0]  %s502_s25, 16, %s504_s0, [#allocation4]  }
 0x377   :  { %v493_v45 = vpop.f32.mrf.mxu3 }
 0x378   :  { %662 = dma.done.wait [#allocation4], 16  }
 0x379   :  { %663 = vsyncadd [#allocation4], 4294967280 }
 0x37a   :  { %511 = vsyncpa [#allocation4], 1 }

</bundles_post_ra>
